<compile_context>
chip_gen: v6e
topology: v6e:2x2x1
jax: 0.10.0
libtpu: 0.0.40
codegen_flags: <defaults>
</compile_context>

<pallas_src>
import functools

import jax
import jax.numpy as jnp
from jax.experimental import pallas as pl
from jax.experimental.pallas import tpu as pltpu


def _t5_layernorm_kernel(x_ref, w_ref, o_ref, *, eps):
    """One row-tile of T5LayerNorm.

    x_ref: (tm, H) VMEM  (input rows, native dtype)
    w_ref: (1, H)  VMEM  (scale, native dtype)
    o_ref: (tm, H) VMEM  (output rows)
    """
    x = x_ref[...].astype(jnp.float32)                       # (tm, H) f32
    variance = jnp.mean(x * x, axis=-1, keepdims=True)       # (tm, 1) f32
    y = x * jax.lax.rsqrt(variance + eps)                    # (tm, H) f32

    w = w_ref[...]                                           # (1, H) native
    # Match torch: cast normalized activations to half precision iff the
    # weight lives in half precision, then scale in that dtype.
    if w.dtype == jnp.bfloat16 or w.dtype == jnp.float16:
        y = y.astype(w.dtype)
    o_ref[...] = (w * y).astype(o_ref.dtype)


def _round_up(x, m):
    return (x + m - 1) // m * m


def t5_layer_norm(hidden_states, weight, *, eps=1e-6, tm=256):
    """hidden_states: (..., H); weight: (H,). Returns T5LayerNorm(hidden)."""
    orig_shape = hidden_states.shape
    H = orig_shape[-1]
    M = 1
    for d in orig_shape[:-1]:
        M *= d

    x2d = hidden_states.reshape(M, H)
    w2d = weight.reshape(1, H)

    # Row tile: big (MXU/VPU friendly), multiple of 8, never larger than the
    # (8-rounded) row count; pad rows so the grid always divides evenly.
    tm = min(tm, _round_up(M, 8))
    M_pad = _round_up(M, tm)
    if M_pad != M:
        x2d = jnp.pad(x2d, ((0, M_pad - M), (0, 0)))

    # Output dtype follows the torch promotion rules: half iff weight is half,
    # otherwise float32 (x * f32-rsqrt promotes to f32).
    if weight.dtype == jnp.bfloat16 or weight.dtype == jnp.float16:
        out_dtype = weight.dtype
    else:
        out_dtype = jnp.float32

    kernel = functools.partial(_t5_layernorm_kernel, eps=eps)

    out2d = pl.pallas_call(
        kernel,
        out_shape=jax.ShapeDtypeStruct((M_pad, H), out_dtype),
        grid_spec=pltpu.PrefetchScalarGridSpec(
            num_scalar_prefetch=0,
            grid=(M_pad // tm,),
            in_specs=[
                pl.BlockSpec((tm, H), lambda i: (i, 0)),
                pl.BlockSpec((1, H), lambda i: (0, 0)),
            ],
            out_specs=pl.BlockSpec((tm, H), lambda i: (i, 0)),
        ),
        compiler_params=pltpu.CompilerParams(
            dimension_semantics=("parallel",)),
        cost_estimate=pl.CostEstimate(
            flops=5 * M_pad * H,
            transcendentals=M_pad,
            bytes_accessed=(M_pad * H * x2d.dtype.itemsize
                            + H * weight.dtype.itemsize
                            + M_pad * H * jnp.dtype(out_dtype).itemsize),
        ),
    )(x2d, w2d)

    if M_pad != M:
        out2d = out2d[:M]
    return out2d.reshape(orig_shape)


def _reference(hidden_states, weight, eps=1e-6):
    xf = hidden_states.astype(jnp.float32)
    variance = jnp.mean(xf * xf, axis=-1, keepdims=True)
    y = hidden_states.astype(jnp.float32) * jax.lax.rsqrt(variance + eps)
    if weight.dtype == jnp.bfloat16 or weight.dtype == jnp.float16:
        y = y.astype(weight.dtype)
    return weight * y


if __name__ == "__main__":
    key = jax.random.PRNGKey(0)
    k1, k2, k3, k4 = jax.random.split(key, 4)

    # --- Test 1: small f32 config (batch=2, seq=8, hidden=32) ---
    B, S, H = 2, 8, 32
    x = jax.random.normal(k1, (B, S, H), dtype=jnp.float32)
    w = 1.0 + 0.1 * jax.random.normal(k2, (H,), dtype=jnp.float32)

    out = jax.jit(functools.partial(t5_layer_norm, eps=1e-6))(x, w)
    out = jax.block_until_ready(out)
    ref = _reference(x, w)
    assert out.shape == (B, S, H)
    assert out.dtype == jnp.float32
    assert jnp.allclose(out, ref, atol=1e-5, rtol=1e-5), "f32 mismatch"

    # --- Test 2: bf16 inputs + bf16 weight, ragged row count (pads to tile) ---
    B2, S2, H2 = 2, 130, 256          # M=260 -> multi-tile grid with padding
    x2 = jax.random.normal(k3, (B2, S2, H2), dtype=jnp.bfloat16)
    w2 = (1.0 + 0.1 * jax.random.normal(k4, (H2,), dtype=jnp.float32)
          ).astype(jnp.bfloat16)

    out2 = jax.jit(functools.partial(t5_layer_norm, eps=1e-6))(x2, w2)
    out2 = jax.block_until_ready(out2)
    ref2 = _reference(x2, w2)
    assert out2.shape == (B2, S2, H2)
    assert out2.dtype == jnp.bfloat16
    assert jnp.allclose(out2.astype(jnp.float32), ref2.astype(jnp.float32),
                        atol=2e-2, rtol=2e-2), "bf16 mismatch"

    print("KERNEL_OK")
</pallas_src>

<mosaic_0001>
module attributes {stable_mosaic.version = 11 : i64} {
  func.func @_t5_layernorm_kernel(%arg0: i32, %arg1: memref<16x32xf32, #tpu.memory_space<vmem>>, %arg2: memref<1x32xf32, #tpu.memory_space<vmem>>, %arg3: memref<16x32xf32, #tpu.memory_space<vmem>>) attributes {dimension_semantics = [#tpu.dimension_semantics<parallel>], iteration_bounds = array<i64: 1>, scalar_prefetch = 0 : i64, scratch_operands = 0 : i64, tpu.core_type = #tpu.core_type<tc>, window_params = [{transform_indices = @transform_0, window_bounds = array<i64: 16, 32>}, {pipeline_mode = #tpu.pipeline_mode<synchronous>, transform_indices = @transform_1, window_bounds = array<i64: 1, 32>}, {transform_indices = @transform_2, window_bounds = array<i64: 16, 32>}]} {
    %c0 = arith.constant 0 : index
    %c0_0 = arith.constant 0 : index
    %0 = vector.load %arg1[%c0, %c0_0] : memref<16x32xf32, #tpu.memory_space<vmem>>, vector<16x32xf32>
    %1 = arith.mulf %0, %0 : vector<16x32xf32>
    %cst = arith.constant dense<0.000000e+00> : vector<16xf32>
    %2 = vector.multi_reduction <add>, %1, %cst [1] : vector<16x32xf32> to vector<16xf32>
    %3 = vector.shape_cast %2 : vector<16xf32> to vector<16x1xf32>
    %cst_1 = arith.constant 3.200000e+01 : f32
    %4 = vector.broadcast %cst_1 : f32 to vector<16x1xf32>
    %5 = arith.divf %3, %4 : vector<16x1xf32>
    %cst_2 = arith.constant 9.99999997E-7 : f32
    %6 = vector.broadcast %cst_2 : f32 to vector<16x1xf32>
    %7 = arith.addf %5, %6 : vector<16x1xf32>
    %8 = math.rsqrt %7 : vector<16x1xf32>
    %9 = vector.broadcast %8 : vector<16x1xf32> to vector<16x32xf32>
    %10 = arith.mulf %0, %9 : vector<16x32xf32>
    %c0_3 = arith.constant 0 : index
    %c0_4 = arith.constant 0 : index
    %11 = vector.load %arg2[%c0_3, %c0_4] : memref<1x32xf32, #tpu.memory_space<vmem>>, vector<1x32xf32>
    %12 = vector.broadcast %11 : vector<1x32xf32> to vector<16x32xf32>
    %13 = arith.mulf %12, %10 : vector<16x32xf32>
    %c0_5 = arith.constant 0 : index
    %c0_6 = arith.constant 0 : index
    %14 = vector.load %arg3[%c0_5, %c0_6] : memref<16x32xf32, #tpu.memory_space<vmem>>, vector<16x32xf32>
    tpu.vector_store %arg3[%c0_5, %c0_6], %13 {strides = array<i32>} : memref<16x32xf32, #tpu.memory_space<vmem>>, vector<16x32xf32>,
    return
  }
  func.func @transform_0(%arg0: i32) -> (i32, i32) {
    %c0_i32 = arith.constant 0 : i32
    %c0_i32_0 = arith.constant 0 : i32
    return %arg0, %c0_i32 : i32, i32
  }
  func.func @transform_1(%arg0: i32) -> (i32, i32) {
    %c0_i32 = arith.constant 0 : i32
    %c0_i32_0 = arith.constant 0 : i32
    %c0_i32_1 = arith.constant 0 : i32
    return %c0_i32, %c0_i32_0 : i32, i32
  }
  func.func @transform_2(%arg0: i32) -> (i32, i32) {
    %c0_i32 = arith.constant 0 : i32
    %c0_i32_0 = arith.constant 0 : i32
    return %arg0, %c0_i32 : i32, i32
  }
}

</mosaic_0001>

<bundles_post_ra>
// kernel: t5_layer_norm.1
= control target key start
LH: loop header
LB: loop body
LE: loop exit
PB: predicated region body
PF: predicated region fallthrough
CT: control target
= control target key end

     0   :  { %7 = vsyncpa [#allocation3], 0  ;;  %s165_s0 = inlined_call_operand.hbm [shape: f32[16,32], index: 0, kind: input, shape index: {}]   ;;  %s166_s1 = inlined_call_operand.vmem [shape: f32[1,32], index: 1, kind: input, shape index: {}]   ;;  %s167_s2 = inlined_call_operand.hbm [shape: f32[16,32], index: 2, kind: output, shape index: {}]  }
   0x1   :  { %8 = vsyncpa [#allocation4], 0  ;;  %s127_s9 = smov [#allocation2]  }
   0x2   :  { %s14_s10 = sshll.u32 %s127_s9, 4  ;;  %s15_s10 = int_to_ptr.vmem [resolvable:$true] %s14_s10 }
   0x3   :  { %s91_s11 = scalar_lea.vmem %s15_s10, 256  ;;  %p96_p1 = scmp.lt.s32.totalorder %s15_s10, %s15_s10 }
   0x4   :  { %p92_p0 = scmp.ne.s32.totalorder %s15_s10, %s91_s11  ;;  %p97_p2 = scmp.lt.s32.totalorder %s91_s11, %s91_s11 }
   0x6   :  { %p98_p3 = por %p97_p2, %p96_p1 }
   0x8   :  { %p99_p4 = pnand %p98_p3, %p92_p0 }
   0xa   :  { %102 = shalt.err (!%p99_p4)
}
   0xb   :  { %s128_s12 = smov 128   ;;  %s129_s13 = smov 8  }
   0xc   :  { %20 = dma.hbm_to_vmem [thread:$0]  %s165_s0, 256, %s15_s10, [#allocation3], %s128_s12, %s128_s12, %s129_s13  }
   0xd   :  { %123 = dma.done.wait [#allocation3], 256  }
   0xe   :  { %124 = vsyncadd [#allocation3], 4294967040  ;;  %v26_v0 = vld [vmem:[#allocation2] sm:$0xff]  ;;  %vm30_vm0 = vcmask 261120   ;;  %v27_v1 = vld [vmem:[#allocation2 + $0x8] sm:$0xff]  ;;  %s130_s17 = smov [#allocation5]  }
   0xf   :  { %v28_v2 = vmul.f32 %v26_v0, %v26_v0  ;;  %v29_v3 = vmul.f32 %v27_v1, %v27_v1  ;;  %v74_v13 = vld [vmem:[%s166_s1] ss:$0 sm:$0xff]  ;;  %s62_s18 = sshll.u32 %s130_s17, 4  ;;  %s63_s18 = int_to_ptr.vmem [resolvable:$true] %s62_s18 }
  0x10   :  { %s103_s19 = scalar_lea.vmem %s63_s18, 256  ;;  %p108_p6 = scmp.lt.s32.totalorder %s63_s18, %s63_s18 }
  0x11   :  { %v31_v4 = vsel %vm30_vm0, %v28_v2, 0.0  ;;  %v34_v5 = vsel %vm30_vm0, %v29_v3, 0.0  ;;  %p104_p5 = scmp.ne.s32.totalorder %s63_s18, %s103_s19  ;;  %p109_p7 = scmp.lt.s32.totalorder %s103_s19, %s103_s19 }
  0x12   :  { %32 = vadd.xlane.f32.xlu0 %v31_v4 }
  0x13   :  { %p110_p8 = por %p109_p7, %p108_p6 }
  0x15   :  { %p111_p9 = pnand %p110_p8, %p104_p5 }
  0x16   :  { %35 = vadd.xlane.f32.xlu0 %v34_v5 }
  0x9b   :  { %v33_v6 = vpop.xlane.xlu0 %32 }
  0x9c   :  { %v38_v7 = vmul.f32 0.03125, %v33_v6 }
  0x9e   :  { %v40_v8 = vadd.f32 1e-06, %v38_v7 }
  0x9f   :  { %v36_v9 = vpop.xlane.xlu0 %35 }
  0xa0   :  { %79 = vrsqrt.f32 %v40_v8  ;;  %v39_v10 = vmul.f32 0.03125, %v36_v9 }
  0xa2   :  { %v41_v11 = vadd.f32 1e-06, %v39_v10 }
  0xa4   :  { %81 = vrsqrt.f32 %v41_v11 }
  0xad   :  { %v80_v12 = vpop.eup %79 }
  0xae   :  { %v44_v14 = vmul.f32 %v80_v12, %v26_v0 }
  0xb0   :  { %v53_v15 = vmul.f32 %v74_v13, %v44_v14 }
  0xb1   :  { %v82_v16 = vpop.eup %81 }
  0xb2   :  { %v45_v17 = vmul.f32 %v82_v16, %v27_v1  ;;  %55 = vst.msk [vmem:[#allocation5] sm:$0xff] %vm30_vm0, %v53_v15 }
  0xb4   :  { %v54_v18 = vmul.f32 %v74_v13, %v45_v17 }
  0xb6   :  { %56 = vst.msk [vmem:[#allocation5 + $0x8] sm:$0xff] %vm30_vm0, %v54_v18 }
  0xb7   :  { %114 = shalt.err (!%p111_p9)
}
  0xb8   :  { %68 = dma.vmem_to_hbm [thread:$0]  %s63_s18, 256, %s167_s2, [#allocation4], %s128_s12, %s128_s12, %s129_s13  }
  0xb9   :  { %125 = dma.done.wait [#allocation4], 256  }
  0xba   :  { %126 = vsyncadd [#allocation4], 4294967040 }
  0xbb   :  { %72 = vsyncpa [#allocation3], 1 }
  0xbc   :  { %73 = vsyncpa [#allocation4], 1 }

</bundles_post_ra>
